<compile_context>
chip_gen: v7x
topology: tpu7x:2x2x1
jax: 0.10.0
libtpu: 0.0.40
codegen_flags: <defaults>
</compile_context>

<pallas_src>
import jax
import jax.numpy as jnp
from jax.experimental import pallas as pl
from jax.experimental.pallas import tpu as pltpu

_SUBLANE = 8                          # f32 sublane granularity
_MAX_TILE_B = 512                     # ~85% of HBM roofline; larger is flat
_STREAM_BUDGET = 24 * 1024 * 1024     # VMEM budget for double-buffered x/out


def _round_up(n, m):
    return ((n + m - 1) // m) * m


def _flatnet_kernel(x_ref, w_ref, b_ref, o_ref):
    # x tile (TB, Din) -> bf16 (no-op if already bf16); w (Din, Dout) bf16.
    # MXU matmul with f32 accumulation, f32 bias add, masked store of the
    # (TB, Dout) output tile (ragged final batch block handled by Pallas).
    x = x_ref[...].astype(jnp.bfloat16)
    acc = jnp.dot(x, w_ref[...], preferred_element_type=jnp.float32)
    o_ref[...] = (acc + b_ref[...]).astype(o_ref.dtype)


def prepare_flatnet_params(weight, bias):
    """One-time repack of PyTorch-convention Linear params.

    weight: (Dout, Din) -> w_packed (Din, Dout) bf16  (pre-transposed, no pad)
    bias:   (Dout,)     -> b_packed (1, Dout)  f32
    """
    w_packed = weight.T.astype(jnp.bfloat16)
    b_packed = bias.astype(jnp.float32).reshape(1, -1)
    return w_packed, b_packed


def _pick_tile_b(batch, d_in, d_out, x_itemsize):
    """Batch tile from a VMEM budget; >=2 grid steps when batch allows."""
    per_row = 2 * (d_in * x_itemsize + d_out * 4)   # dbl-buffered x + f32 out
    tb = min(_MAX_TILE_B, max(_SUBLANE, _STREAM_BUDGET // max(per_row, 1)))
    tb = max(_SUBLANE, (tb // _SUBLANE) * _SUBLANE)
    if batch <= tb:
        if batch >= 2 * _SUBLANE:
            # Split into >=2 "parallel" grid steps so both v7x TCs get work.
            tb = _round_up((batch + 1) // 2, _SUBLANE)
        else:
            tb = batch  # single block == full batch dim (always legal)
    return tb


@jax.jit
def flatnet_forward(x, w_packed, b_packed):
    """x: (B, Din) f32 or bf16; w_packed/b_packed from prepare_flatnet_params."""
    batch, d_in = x.shape
    d_in_w, d_out = w_packed.shape
    assert d_in == d_in_w, "input feature dim must match packed weight"

    x_itemsize = x.dtype.itemsize
    tb = _pick_tile_b(batch, d_in, d_out, x_itemsize)
    grid = (pl.cdiv(batch, tb),)

    # Actual VMEM footprint: resident W (counted twice for safety) + bias,
    # plus double-buffered x and out tiles; 25% + 2 MiB headroom, 4 MiB floor.
    footprint = (
        2 * d_in * d_out * 2            # weight (bf16), x2 safety margin
        + d_out * 4                     # bias (f32)
        + 2 * tb * d_in * x_itemsize    # x tiles (double-buffered)
        + 2 * tb * d_out * 4            # out tiles (double-buffered)
    )
    vmem_limit = int(footprint * 5 // 4) + 2 * 1024 * 1024
    vmem_limit = max(vmem_limit, 4 * 1024 * 1024)
    vmem_limit = min(vmem_limit, 128 * 1024 * 1024)

    return pl.pallas_call(
        _flatnet_kernel,
        out_shape=jax.ShapeDtypeStruct((batch, d_out), jnp.float32),
        grid=grid,
        in_specs=[
            # x batch tile; ragged final block is masked by Pallas.
            pl.BlockSpec((tb, d_in), lambda i: (i, 0)),
            # Grid-invariant weight / bias: resident, single-buffered.
            pl.BlockSpec((d_in, d_out), lambda i: (0, 0),
                         pipeline_mode=pl.Buffered(1)),
            pl.BlockSpec((1, d_out), lambda i: (0, 0),
                         pipeline_mode=pl.Buffered(1)),
        ],
        out_specs=pl.BlockSpec((tb, d_out), lambda i: (i, 0)),
        compiler_params=pltpu.CompilerParams(
            dimension_semantics=("parallel",),
            vmem_limit_bytes=vmem_limit,
        ),
    )(x, w_packed, b_packed)


def init_flatnet_params(key, d_inputs, d_outputs):
    """Deterministic synthetic init mirroring FlatNet.__init__:
    - weight: kaiming_normal_(mode='fan_in') -> N(0, sqrt(2/fan_in))
    - bias:   PyTorch Linear default U(-1/sqrt(fan_in), 1/sqrt(fan_in))
    """
    kw, kb = jax.random.split(key)
    std = (2.0 / d_inputs) ** 0.5
    weight = std * jax.random.normal(kw, (d_outputs, d_inputs), dtype=jnp.float32)
    bound = 1.0 / (d_inputs ** 0.5)
    bias = jax.random.uniform(
        kb, (d_outputs,), minval=-bound, maxval=bound, dtype=jnp.float32
    )
    return weight, bias


if __name__ == "__main__":
    key = jax.random.PRNGKey(0)
    k_x, k_p = jax.random.split(key)

    batch = 20          # not a multiple of the batch tile -> exercises masking
    d_inputs = 32
    d_outputs = 16

    x = jax.random.normal(k_x, (batch, d_inputs), dtype=jnp.float32)
    weight, bias = init_flatnet_params(k_p, d_inputs, d_outputs)

    # One-time parameter repack (transpose + bf16) done at init, not per call.
    w_packed, b_packed = prepare_flatnet_params(weight, bias)

    out = flatnet_forward(x, w_packed, b_packed)
    out = jax.block_until_ready(out)
    assert out.shape == (batch, d_outputs)
    assert out.dtype == jnp.float32

    # f32 reference (same math as torch Linear); the kernel uses bf16 MXU
    # inputs with f32 accumulation, so compare at bf16-level tolerance.
    ref_f32 = x @ weight.T + bias
    assert jnp.allclose(out, ref_f32, atol=5e-2, rtol=5e-2)

    # Tighter check against a matched bf16-input / f32-accum reference.
    ref_bf16 = (
        jnp.dot(
            x.astype(jnp.bfloat16),
            weight.T.astype(jnp.bfloat16),
            preferred_element_type=jnp.float32,
        )
        + bias
    )
    assert jnp.allclose(out, ref_bf16, atol=2e-3, rtol=2e-3)

    print("KERNEL_OK")
</pallas_src>

<mosaic_0001>
module attributes {stable_mosaic.version = 11 : i64} {
  func.func @_flatnet_kernel(%arg0: i32, %arg1: memref<16x32xf32, #tpu.memory_space<vmem>>, %arg2: memref<32x16xbf16, #tpu.memory_space<vmem>>, %arg3: memref<1x16xf32, #tpu.memory_space<vmem>>, %arg4: memref<16x16xf32, #tpu.memory_space<vmem>>) attributes {dimension_semantics = [#tpu.dimension_semantics<parallel>], iteration_bounds = array<i64: 2>, scalar_prefetch = 0 : i64, scratch_operands = 0 : i64, tpu.core_type = #tpu.core_type<tc>, window_params = [{transform_indices = @transform_0, window_bounds = array<i64: 16, 32>}, {pipeline_mode = #tpu.pipeline_mode<synchronous>, transform_indices = @transform_1, window_bounds = array<i64: 32, 16>}, {pipeline_mode = #tpu.pipeline_mode<synchronous>, transform_indices = @transform_2, window_bounds = array<i64: 1, 16>}, {transform_indices = @transform_3, window_bounds = array<i64: 16, 16>}]} {
    %c0 = arith.constant 0 : index
    %c0_0 = arith.constant 0 : index
    %0 = vector.load %arg1[%c0, %c0_0] : memref<16x32xf32, #tpu.memory_space<vmem>>, vector<16x32xf32>
    %1 = arith.truncf %0 : vector<16x32xf32> to vector<16x32xbf16>
    %c0_1 = arith.constant 0 : index
    %c0_2 = arith.constant 0 : index
    %2 = vector.load %arg2[%c0_1, %c0_2] : memref<32x16xbf16, #tpu.memory_space<vmem>>, vector<32x16xbf16>
    %cst = arith.constant dense<0.000000e+00> : vector<16x16xf32>
    %3 = tpu.matmul %1, %2, %cst {dimension_numbers = #tpu.dot_dimension_numbers<[1], [0], [0], [1], [0, 0, 1, 1], [], []>} : vector<16x32xbf16>, vector<32x16xbf16>, vector<16x16xf32> -> vector<16x16xf32>
    %c0_3 = arith.constant 0 : index
    %c0_4 = arith.constant 0 : index
    %4 = vector.load %arg3[%c0_3, %c0_4] : memref<1x16xf32, #tpu.memory_space<vmem>>, vector<1x16xf32>
    %5 = vector.broadcast %4 : vector<1x16xf32> to vector<16x16xf32>
    %6 = arith.addf %3, %5 : vector<16x16xf32>
    %c0_5 = arith.constant 0 : index
    %c0_6 = arith.constant 0 : index
    %7 = vector.load %arg4[%c0_5, %c0_6] : memref<16x16xf32, #tpu.memory_space<vmem>>, vector<16x16xf32>
    tpu.vector_store %arg4[%c0_5, %c0_6], %6 {strides = array<i32>} : memref<16x16xf32, #tpu.memory_space<vmem>>, vector<16x16xf32>,
    return
  }
  func.func @transform_0(%arg0: i32) -> (i32, i32) {
    %c0_i32 = arith.constant 0 : i32
    %c0_i32_0 = arith.constant 0 : i32
    return %arg0, %c0_i32 : i32, i32
  }
  func.func @transform_1(%arg0: i32) -> (i32, i32) {
    %c0_i32 = arith.constant 0 : i32
    %c0_i32_0 = arith.constant 0 : i32
    %c0_i32_1 = arith.constant 0 : i32
    return %c0_i32, %c0_i32_0 : i32, i32
  }
  func.func @transform_2(%arg0: i32) -> (i32, i32) {
    %c0_i32 = arith.constant 0 : i32
    %c0_i32_0 = arith.constant 0 : i32
    %c0_i32_1 = arith.constant 0 : i32
    return %c0_i32, %c0_i32_0 : i32, i32
  }
  func.func @transform_3(%arg0: i32) -> (i32, i32) {
    %c0_i32 = arith.constant 0 : i32
    %c0_i32_0 = arith.constant 0 : i32
    return %arg0, %c0_i32 : i32, i32
  }
}

</mosaic_0001>

<bundles_post_ra>
// kernel: flatnet_forward.1
= control target key start
LH: loop header
LB: loop body
LE: loop exit
PB: predicated region body
PF: predicated region fallthrough
CT: control target
= control target key end

     0   :  { %s730_s12 = smov 0   ;;  %s732_s13 = smov 0   ;;  %s822_s0 = inlined_call_operand.vmem [shape: f32[20,32], index: 0, kind: input, shape index: {}]   ;;  %s823_s1 = inlined_call_operand.vmem [shape: bf16[32,16], index: 1, kind: input, shape index: {}]   ;;  %s824_s2 = inlined_call_operand.vmem [shape: f32[1,16], index: 2, kind: input, shape index: {}]   ;;  %s825_s3 = inlined_call_operand.vmem [shape: f32[20,16], index: 3, kind: output, shape index: {}]  }
   0x1   :  { %s734_s14 = smov 0  }
   0x2 LB: > { %s743_s15 = sadd.s32 4294967295, %s674_s14   ;;  %s745_s16 = sadd.s32 1, %s674_s14   ;;  %s674_s14 = sphi %s734_s14, %s829_s14   ;;  %s670_s13 = sphi %s732_s13, %s828_s13   ;;  %s666_s12 = sphi %s730_s12, %s827_s12  }
   0x3   : > { %s85_s17 = ssub.s32 %s674_s14, %s745_s16  ;;  %s88_s18 = sadd.s32 1, %s670_s13 }
   0x4   : > { %p86_p0 = scmp.eq.s32.totalorder %s85_s17, 0  ;;  %p98_p1 = scmp.ne.s32.totalorder %s670_s13, %s666_s12 }
   0x5   : > { %p99_p2 = scmp.eq.s32.totalorder %s743_s15, 1  ;;  %p489_p3 = scmp.ge.s32.totalorder %s674_s14, 1 }
   0x6   : > { %s753_s19 = scalar_select %p86_p0, %s670_s13, %s88_s18  }
   0x7   : > { %p755_p4 = por %p99_p2, %p98_p1  ;;  %p146_p5 = scmp.lt.s32.totalorder %s674_s14, 3 }
   0x9   : > { %p147_p6 = pnand %p489_p3, %p146_p5 }
   0xa   : > { %v618_v0 = vld [vmem:[%s823_s1] sm:$0xff] (!%p147_p6)   ;;  %v708_v1 = vmov (!%p147_p6), 0.0   ;;  %v619_v2 = vld [vmem:[%s823_s1 + $0x8] sm:$0xff] (!%p147_p6)   ;;  %vm709_vm0 = vmmov (!%p147_p6), 0   ;;  %s766_s25 = sshll.u32 (!%p147_p6), %s743_s15, 1  ;;  %vm219_vm1 = vcmask (!%p147_p6), 261120  }
   0xb   : > { %150 = sbr.rel (%p147_p6) target bundleno = 291 (0x123), region = 32  ;;  %520 = vmatprep.subr.bf16.mxu0 (!%p147_p6), %v708_v1  ;;  %524 = vmatprep.mubr.msk.bf16.mxu0 (!%p147_p6), %vm709_vm0, %v708_v1  ;;  %p178_p7 = scmp.lt.s32.totalorder (!%p147_p6), %s766_s25, 2  ;;  %v493_v6 = vld [vmem:[%s824_s2] ss:$0 sm:$0xff] (!%p147_p6)  ;;  %vm264_vm2 = vcmask (!%p147_p6), 130048  }
   0xc   : > { %521 = vmatpush3.bf16.msra.mxu0 (!%p147_p6), %v618_v0  ;;  %s170_s4 = sand.u32 (!%p147_p6), 1, %s666_s12  }
   0xd   : > { %522 = vmatprep.subr.bf16.mxu0 (!%p147_p6), %v708_v1  ;;  %s490_s5 = sshll.u32 (!%p147_p6), %s170_s4, 4 }
   0xe   : > { %s777_s8 = scalar_lea.vmem (!%p147_p6), [#allocation2], %s490_s5  }
  0x10   : > { %523 = vmatpush3.bf16.msra.mxu0 (!%p147_p6), %v619_v2 }
  0x12   : > { %s179_s26 = scalar_select %p178_p7, %s766_s25, 2 }
  0x13   : > { %s275_s9 = ssub.s32 (%p755_p4), 3, %s766_s25  ;;  %s514_s10 = sshll.u32 (%p755_p4), %s743_s15, 4 }
  0x14   : > { %s492_s27 = sshll.u32 %s179_s26, 3  ;;  %p276_p8 = scmp.lt.s32.totalorder (%p755_p4), %s275_s9, 2 }
  0x15   : > { %s181_s30 = scalar_lea.vmem %s822_s0, %s492_s27  ;;  %s788_s14 = scalar_lea.vmem (%p755_p4), %s825_s3, %s514_s10  }
  0x16   : > { %v193_v3 = vld [vmem:[%s181_s30] sm:$0xff]  ;;  %v194_v4 = vld [vmem:[%s181_s30 + $0x8] sm:$0xff] }
  0x17   : > { %v195_v5 = vpack.c.bf16 %v194_v4, %v193_v3 }
  0x19   : > { %525 = vmatmul.mubr.msk.bf16.vlgmr.msra.gmra.mrb[0].mxu0 %vm219_vm1, %v195_v5 }
  0xeb   : > { %273 = sbr.rel (!%p755_p4) target bundleno = 291 (0x123), region = 36 }
  0xec   : > { %v257_v7 = vpop.f32.mrb[0].mxu0 }
  0xed   : > { %v258_v8 = vadd.f32 %v493_v6, %v257_v7  ;;  %v526_v9 = vpop.f32.mrb[1].mxu0 }
  0xee   : > { %v260_v10 = vpop.f32.mrb[2].mxu0 }
  0xef   : > { %265 = vst.msk [vmem:[%s777_s8] sm:$0xff] %vm264_vm2, %v258_v8  ;;  %v261_v11 = vadd.f32 %v493_v6, %v260_v10  ;;  %v527_v12 = vpop.f32.mrb[3].mxu0 }
  0xf1   : > { %266 = vst.msk [vmem:[%s777_s8 + $0x8] sm:$0xff] %vm264_vm2, %v261_v11 }
  0xf2   : > { %s831_s9 = smov (!%p276_p8, %s275_s9), 2 }
  0xf3   : > { %s499_s17 = sshll.u32 %s831_s9, 7 }
  0xf4   : > { %p502_p9 = scmp.eq.s32.totalorder %s499_s17, 0 }
  0xf5   : > { %s794_s18 = sshrl.u32 (!%p502_p9), %s831_s9, 1 }
  0xf6   : > { %284 = sbr.rel (%p502_p9) target bundleno = 291 (0x123), region = 40  ;;  %p503_p10 = scmp.le.s32.totalorder (!%p502_p9), %s794_s18, 0 }
  0xfd   : > { %442 = sbr.rel (%p503_p10) target bundleno = 270 (0x10e), region = 116  ;;  %s676_s15 = smov (!%p503_p10), %s788_s14  }
  0xfe   : > { %s680_s20 = smov (!%p503_p10), %s777_s8   ;;  %s684_s21 = smov (!%p503_p10), 0  }
  0xff   : > { %s688_s22 = smov (!%p503_p10), 0  }
 0x104 LB: >> { %v348_v13 = vld [vmem:[%s682_s20] sm:$0xff]  ;;  %v350_v14 = vld [vmem:[%s682_s20 + $0x8] sm:$0xff]  ;;  %s352_s23 = sadd.s32 1, %s686_s21  ;;  %s342_s22 = sadd.s32 1, %s690_s22   ;;  %s690_s22 = sphi %s688_s22, %s342_s22   ;;  %s686_s21 = sphi %s684_s21, %s685_s21   ;;  %s682_s20 = sphi %s680_s20, %s357_s20   ;;  %s678_s15 = sphi %s676_s15, %s358_s15  }
 0x105   : >> { %349 = vst [vmem:[%s678_s15] sm:$0xff] %v348_v13  ;;  %351 = vst [vmem:[%s678_s15 + $0x8] sm:$0xff] %v350_v14  ;;  %p353_p11 = scmp.ge.s32.totalorder %s352_s23, %s794_s18  ;;  %p341_p12 = scmp.ge.s32.totalorder %s342_s22, %s794_s18 }
 0x107   : >> { %s833_s23 = smov (%p353_p11, %s352_s23), 0  ;;  %344 = sbr.rel (!%p341_p12) target bundleno = 260 (0x104), region = 122 }
 0x108   : >> { %s504_s24 = sshll.u32 %s833_s23, 4  ;;  %s685_s21 = smov %s833_s23  }
 0x109   : >> { %s357_s20 = scalar_lea.vmem %s777_s8, %s504_s24 [#allocation2]   ;;  %s358_s15 = scalar_lea.vmem %s788_s14, %s504_s24  }
 0x10e PF: > { %s804_s25 = sand.u32 1, %s831_s9   ;;  %s515_s26 = sshll.u32 %s794_s18, 4 }
 0x10f   : > { %s363_s27 = scalar_lea.vmem %s777_s8, %s515_s26 [#allocation2]   ;;  %s365_s28 = scalar_lea.vmem %s788_s14, %s515_s26  }
 0x110   : > { %p509_p13 = scmp.le.s32.totalorder %s804_s25, 0 }
 0x111   : > { %s692_s29 = smov (!%p509_p13), %s365_s28   ;;  %s696_s30 = smov (!%p509_p13), %s363_s27  }
 0x112   : > { %456 = sbr.rel (%p509_p13) target bundleno = 291 (0x123), region = 127  ;;  %s700_s4 = smov (!%p509_p13), 0  }
 0x113   : > { %s704_s5 = smov (!%p509_p13), 0  }
 0x119 LB: >> { %v375_v15 = vld [vmem:[%s698_s30] sm:$0xff]  ;;  %s377_s6 = sadd.s32 1, %s702_s4  ;;  %s369_s5 = sadd.s32 1, %s706_s5   ;;  %s706_s5 = sphi %s704_s5, %s369_s5   ;;  %s702_s4 = sphi %s700_s4, %s701_s4   ;;  %s698_s30 = sphi %s696_s30, %s382_s30   ;;  %s694_s29 = sphi %s692_s29, %s383_s29  }
 0x11a   : >> { %376 = vst [vmem:[%s694_s29] sm:$0xff] %v375_v15  ;;  %p378_p0 = scmp.ge.s32.totalorder %s377_s6, %s804_s25  ;;  %p368_p1 = scmp.ge.s32.totalorder %s369_s5, %s804_s25 }
 0x11c   : >> { %s835_s6 = smov (%p378_p0, %s377_s6), 0  ;;  %371 = sbr.rel (!%p368_p1) target bundleno = 281 (0x119), region = 133 }
 0x11d   : >> { %s510_s7 = sshll.u32 %s835_s6, 3  ;;  %s701_s4 = smov %s835_s6  }
 0x11e   : >> { %s382_s30 = scalar_lea.vmem %s363_s27, %s510_s7 [#allocation2]   ;;  %s383_s29 = scalar_lea.vmem %s365_s28, %s510_s7  }
 0x123 PF: > { %p10_p2 = scmp.ge.s32.totalorder %s745_s16, 4   ;;  %s827_s12 = smov %s670_s13 }
 0x124   : > { %s828_s13 = smov %s753_s19  ;;  %s829_s14 = smov %s745_s16 }
 0x125   :  { %12 = sbr.rel (!%p10_p2) target bundleno = 2 (0x2), region = 144 }

</bundles_post_ra>
